<compile_context>
chip_gen: v7x
topology: tpu7x:2x2x1
jax: 0.10.0
libtpu: 0.0.40
codegen_flags: <defaults>
</compile_context>

<pallas_src>
import math
import functools

import jax
import jax.numpy as jnp
from jax import lax
from jax.experimental import pallas as pl
from jax.experimental.pallas import tpu as pltpu


def _round_up(x, m):
    return ((x + m - 1) // m) * m


def _sublane(dtype):
    # rows per vreg sublane group: f32 -> 8, bf16 -> 16, int8/fp8 -> 32
    return max(8, 32 // jnp.dtype(dtype).itemsize)


@functools.lru_cache(maxsize=1)
def _vmem_capacity_bytes():
    try:
        return int(pltpu.get_tpu_info().vmem_capacity_bytes)
    except Exception:
        return 128 * 1024 * 1024  # conservative default (v5e/v6e)


def _gelu_exact(x):
    # PyTorch nn.GELU() default is the exact erf formulation.
    return 0.5 * x * (1.0 + lax.erf(x * (1.0 / math.sqrt(2.0))))


def gelu_mlp_kernel(x_ref, w1_ref, b1_ref, gamma_ref, beta_ref, w2_ref, b2_ref,
                    o_ref, ln_ref, *, d_in):
    """Produces one (tile_m, tile_n) output tile.

    Grid = (row_tiles, col_tiles).  NOTE: axis 1 (j) MUST stay the innermost,
    sequentially-iterated ("arbitrary") axis — the LN cache in `ln_ref` is computed
    at j == 0 and reused for every W2 column tile of the same row tile.
    """
    j = pl.program_id(1)

    @pl.when(j == 0)
    def _():
        # Linear 1 in the operand dtype (bf16 operands -> bf16 MXU), f32 accumulation.
        h = jnp.dot(x_ref[...], w1_ref[...], preferred_element_type=jnp.float32)
        h = h + b1_ref[...].astype(jnp.float32)

        # GELU (exact, erf-based) in f32.
        g = _gelu_exact(h)

        # LayerNorm (eps=1e-5) over the true d_in features; padded hidden columns are
        # exactly zero (zero-padded W1 columns + zero bias -> h = 0, gelu(0) = 0), so
        # plain sums divided by d_in are exact and no mask is needed.  Single-pass
        # moments avoid the centered temporary in this (heaviest) grid step.
        inv_n = jnp.float32(1.0 / d_in)
        mu = jnp.sum(g, axis=-1, keepdims=True) * inv_n
        var = jnp.sum(g * g, axis=-1, keepdims=True) * inv_n - mu * mu
        var = jnp.maximum(var, 0.0)
        ln = (g - mu) * lax.rsqrt(var + 1e-5)
        ln = ln * gamma_ref[...].astype(jnp.float32) + beta_ref[...].astype(jnp.float32)
        # cache in the MXU operand dtype (bf16 on the bf16 path) -> no per-j cast.
        ln_ref[...] = ln.astype(ln_ref.dtype)

    # Linear 2 on the cached LN activations, f32 accumulation.
    out = jnp.dot(ln_ref[...], w2_ref[...], preferred_element_type=jnp.float32)
    out = out + b2_ref[...].astype(jnp.float32)
    o_ref[...] = out.astype(o_ref.dtype)


def prepare_gelu_mlp_params(w1t, b1, gamma, beta, w2t, b2):
    """Pad parameters once at init (hoisted out of the per-call path).

    w1t: (n_in, n_in)  = layers[0].weight.T     b1: (n_in,)
    gamma/beta: (n_in,) LayerNorm affine
    w2t: (n_in, n_out) = layers[-1].weight.T    b2: (n_out,)
    """
    d_in = w1t.shape[0]
    d_out = w2t.shape[1]
    d_in_p = _round_up(d_in, 128)
    p = d_in_p - d_in
    return dict(
        d_in=d_in, d_out=d_out, d_in_p=d_in_p,
        w1t=jnp.pad(w1t, ((0, p), (0, p))),              # zero K pad keeps hidden cols exact
        b1=jnp.pad(b1, (0, p)).reshape(1, d_in_p),
        gamma=jnp.pad(gamma, (0, p)).reshape(1, d_in_p),
        beta=jnp.pad(beta, (0, p)).reshape(1, d_in_p),
        w2t=jnp.pad(w2t, ((0, p), (0, 0))),              # only K padded; N handled by Pallas
        b2=b2.reshape(1, d_out),
    )


def gelu_mlp(x, params, *, tile_m=None, tile_n=None):
    """x: (..., n_in) -> (..., n_out)."""
    d_in, d_out, d_in_p = params["d_in"], params["d_out"], params["d_in_p"]
    assert x.shape[-1] == d_in
    orig_shape = x.shape
    xm = x.reshape(-1, d_in)
    m = xm.shape[0]
    if d_in_p != d_in:  # feature-dim zero pad only (no M pad / no output pad)
        xm = jnp.pad(xm, ((0, 0), (0, d_in_p - d_in)))

    cap = _vmem_capacity_bytes()
    small_vmem = cap <= 64 * 1024 * 1024               # v7x-class part
    if tile_m is None:
        tile_m = 256 if small_vmem else 512
    if tile_n is None:
        tile_n = 512 if small_vmem else 1024

    sub = _sublane(x.dtype)
    tile_n = min(tile_n, _round_up(d_out, 128))         # lane-dense (multiple of 128)
    # clamp to dtype packing granularity and aim for >= 2 row tiles (v7x megacore)
    tile_m = min(tile_m, max(sub, _round_up((m + 1) // 2, sub)))

    grid = (pl.cdiv(m, tile_m), pl.cdiv(d_out, tile_n))

    ln_dtype = params["w2t"].dtype                       # cache in the MXU operand dtype

    # ---- VMEM budget: actual footprint + headroom, clamped below physical ----------
    x_is = xm.dtype.itemsize
    w_is = params["w1t"].dtype.itemsize
    w2_is = params["w2t"].dtype.itemsize
    out_is = x.dtype.itemsize
    ln_is = jnp.dtype(ln_dtype).itemsize
    need = (2 * tile_m * d_in_p * x_is                   # x tile (double-buffered)
            + 2 * d_in_p * d_in_p * w_is                 # W1 (conservative: 2 bufs)
            + 2 * 3 * d_in_p * w_is                      # b1, gamma, beta
            + 2 * d_in_p * tile_n * w2_is                # W2 column tile
            + 2 * tile_n * params["b2"].dtype.itemsize   # b2 column tile
            + 2 * tile_m * tile_n * out_is               # output tile
            + tile_m * d_in_p * ln_is)                   # LN cache scratch
    ceiling = max(32 * 1024 * 1024, cap - 16 * 1024 * 1024)   # never the full 64 MiB on v7x
    vmem_limit = int(min(ceiling, need + 8 * 1024 * 1024))

    nbytes = lambda a: a.size * a.dtype.itemsize
    cost = pl.CostEstimate(
        flops=2 * m * d_in_p * d_in_p + 2 * m * d_in_p * d_out,
        transcendentals=m * d_in_p,  # erf
        bytes_accessed=(nbytes(xm) + nbytes(params["w1t"]) + nbytes(params["w2t"])
                        + nbytes(params["b1"]) + nbytes(params["gamma"])
                        + nbytes(params["beta"]) + nbytes(params["b2"])
                        + m * d_out * out_is),
    )

    kernel = functools.partial(gelu_mlp_kernel, d_in=d_in)
    grid_invariant = lambda i, j: (0, 0)

    def _call(single_buffer_invariants):
        inv_kwargs = {}
        if single_buffer_invariants:
            # W1/b1/gamma/beta never change across the grid: no need to double-buffer.
            inv_kwargs = dict(pipeline_mode=pl.Buffered(1))
        in_specs = [
            pl.BlockSpec((tile_m, d_in_p), lambda i, j: (i, 0)),                 # x rows
            pl.BlockSpec((d_in_p, d_in_p), grid_invariant, **inv_kwargs),        # W1^T
            pl.BlockSpec((1, d_in_p), grid_invariant, **inv_kwargs),             # b1
            pl.BlockSpec((1, d_in_p), grid_invariant, **inv_kwargs),             # gamma
            pl.BlockSpec((1, d_in_p), grid_invariant, **inv_kwargs),             # beta
            pl.BlockSpec((d_in_p, tile_n), lambda i, j: (0, j)),                 # W2^T cols
            pl.BlockSpec((1, tile_n), lambda i, j: (0, j)),                      # b2 cols
        ]
        return pl.pallas_call(
            kernel,
            out_shape=jax.ShapeDtypeStruct((m, d_out), x.dtype),
            grid_spec=pltpu.PrefetchScalarGridSpec(
                num_scalar_prefetch=0,
                grid=grid,
                in_specs=in_specs,
                out_specs=pl.BlockSpec((tile_m, tile_n), lambda i, j: (i, j)),
                scratch_shapes=[pltpu.VMEM((tile_m, d_in_p), ln_dtype)],         # LN cache
            ),
            compiler_params=pltpu.CompilerParams(
                # axis 0 parallel (megacore split), axis 1 MUST stay "arbitrary"
                # (sequential, innermost) for the LN-cache reuse to be valid.
                dimension_semantics=("parallel", "arbitrary"),
                vmem_limit_bytes=vmem_limit,
            ),
            cost_estimate=cost,
        )(xm, params["w1t"], params["b1"], params["gamma"], params["beta"],
          params["w2t"], params["b2"])

    try:
        out = _call(True)
    except Exception:
        # Fallback for JAX versions that reject pipeline_mode=pl.Buffered(1).
        out = _call(False)

    return out.reshape(orig_shape[:-1] + (d_out,))


# ----------------------------- test harness -------------------------------------------
def xavier_uniform(key, shape):
    # shape = (fan_out, fan_in) in PyTorch Linear convention
    fan_out, fan_in = shape
    bound = math.sqrt(6.0 / (fan_in + fan_out))
    return jax.random.uniform(key, shape, jnp.float32, -bound, bound)


def reference_forward(x, w1t, b1, gamma, beta, w2t, b2):
    h = x @ w1t + b1
    g = 0.5 * h * (1.0 + lax.erf(h / jnp.sqrt(2.0)))
    mu = jnp.mean(g, -1, keepdims=True)
    var = jnp.mean((g - mu) ** 2, -1, keepdims=True)
    ln = (g - mu) / jnp.sqrt(var + 1e-5) * gamma + beta
    return ln @ w2t + b2


if __name__ == "__main__":
    key = jax.random.PRNGKey(0)
    batch, seq = 2, 8
    n_in, n_out = 32, 16

    k_x, k_w1, k_b1, k_w2, k_b2 = jax.random.split(key, 5)

    x = jax.random.normal(k_x, (batch, seq, n_in), jnp.float32)

    # PyTorch Linear weights are (out, in); kernel takes the transposed (in, out) form.
    w1 = xavier_uniform(k_w1, (n_in, n_in))            # layers[0].weight
    b1 = 0.01 * jax.random.normal(k_b1, (n_in,))       # layers[0].bias
    w2 = xavier_uniform(k_w2, (n_out, n_in))           # layers[-1].weight
    b2 = 0.01 * jax.random.normal(k_b2, (n_out,))      # layers[-1].bias
    gamma = jnp.ones((n_in,), jnp.float32)             # LayerNorm default weight
    beta = jnp.zeros((n_in,), jnp.float32)             # LayerNorm default bias

    w1t, w2t = w1.T, w2.T

    # Pad parameters once (hoisted out of the per-call path).
    params_f32 = prepare_gelu_mlp_params(w1t, b1, gamma, beta, w2t, b2)

    # f32 run, checked against the pure-JAX reference.
    out = gelu_mlp(x, params_f32)
    out = jax.block_until_ready(out)

    ref = reference_forward(x, w1t, b1, gamma, beta, w2t, b2)
    assert out.shape == (batch, seq, n_out)
    assert jnp.allclose(out, ref, atol=1e-4, rtol=1e-4)

    # bf16 operands exercise the bf16 MXU path (f32 accumulation + f32 LN statistics
    # inside the kernel); sanity-check only, no tight tolerance.
    params_bf16 = prepare_gelu_mlp_params(
        w1t.astype(jnp.bfloat16), b1.astype(jnp.bfloat16),
        gamma.astype(jnp.bfloat16), beta.astype(jnp.bfloat16),
        w2t.astype(jnp.bfloat16), b2.astype(jnp.bfloat16))
    out_bf16 = gelu_mlp(x.astype(jnp.bfloat16), params_bf16)
    out_bf16 = jax.block_until_ready(out_bf16)
    assert out_bf16.shape == (batch, seq, n_out)
    assert bool(jnp.all(jnp.isfinite(out_bf16.astype(jnp.float32))))

    print("KERNEL_OK")
</pallas_src>

<mosaic_0001>
module attributes {stable_mosaic.version = 11 : i64} {
  func.func @gelu_mlp_kernel(%arg0: i32, %arg1: i32, %arg2: memref<8x128xf32, #tpu.memory_space<vmem>>, %arg3: memref<128x128xf32, #tpu.memory_space<vmem>>, %arg4: memref<1x128xf32, #tpu.memory_space<vmem>>, %arg5: memref<1x128xf32, #tpu.memory_space<vmem>>, %arg6: memref<1x128xf32, #tpu.memory_space<vmem>>, %arg7: memref<128x128xf32, #tpu.memory_space<vmem>>, %arg8: memref<1x128xf32, #tpu.memory_space<vmem>>, %arg9: memref<8x128xf32, #tpu.memory_space<vmem>>, %arg10: memref<8x128xf32, #tpu.memory_space<vmem>>) attributes {dimension_semantics = [#tpu.dimension_semantics<parallel>, #tpu.dimension_semantics<arbitrary>], iteration_bounds = array<i64: 2, 1>, scalar_prefetch = 0 : i64, scratch_operands = 1 : i64, tpu.core_type = #tpu.core_type<tc>, window_params = [{transform_indices = @transform_0, window_bounds = array<i64: 8, 128>}, {pipeline_mode = #tpu.pipeline_mode<synchronous>, transform_indices = @transform_1, window_bounds = array<i64: 128, 128>}, {pipeline_mode = #tpu.pipeline_mode<synchronous>, transform_indices = @transform_2, window_bounds = array<i64: 1, 128>}, {pipeline_mode = #tpu.pipeline_mode<synchronous>, transform_indices = @transform_3, window_bounds = array<i64: 1, 128>}, {pipeline_mode = #tpu.pipeline_mode<synchronous>, transform_indices = @transform_4, window_bounds = array<i64: 1, 128>}, {transform_indices = @transform_5, window_bounds = array<i64: 128, 128>}, {transform_indices = @transform_6, window_bounds = array<i64: 1, 128>}, {transform_indices = @transform_7, window_bounds = array<i64: 8, 128>}]} {
    %c0_i32 = arith.constant 0 : i32
    %0 = arith.cmpi eq, %arg1, %c0_i32 : i32
    %1 = arith.extui %0 : i1 to i32
    %c0_i32_0 = arith.constant 0 : i32
    %2 = arith.cmpi ne, %1, %c0_i32_0 : i32
    scf.if %2 {
      %c0_8 = arith.constant 0 : index
      %c0_9 = arith.constant 0 : index
      %10 = vector.load %arg2[%c0_8, %c0_9] : memref<8x128xf32, #tpu.memory_space<vmem>>, vector<8x128xf32>
      %c0_10 = arith.constant 0 : index
      %c0_11 = arith.constant 0 : index
      %11 = vector.load %arg3[%c0_10, %c0_11] : memref<128x128xf32, #tpu.memory_space<vmem>>, vector<128x128xf32>
      %cst_12 = arith.constant dense<0.000000e+00> : vector<8x128xf32>
      %12 = tpu.matmul %10, %11, %cst_12 {dimension_numbers = #tpu.dot_dimension_numbers<[1], [0], [0], [1], [0, 0, 1, 1], [], []>} : vector<8x128xf32>, vector<128x128xf32>, vector<8x128xf32> -> vector<8x128xf32>
      %c0_13 = arith.constant 0 : index
      %c0_14 = arith.constant 0 : index
      %13 = vector.load %arg4[%c0_13, %c0_14] : memref<1x128xf32, #tpu.memory_space<vmem>>, vector<1x128xf32>
      %14 = vector.broadcast %13 : vector<1x128xf32> to vector<8x128xf32>
      %15 = arith.addf %12, %14 : vector<8x128xf32>
      %cst_15 = arith.constant 5.000000e-01 : f32
      %16 = vector.broadcast %cst_15 : f32 to vector<8x128xf32>
      %17 = arith.mulf %16, %15 : vector<8x128xf32>
      %cst_16 = arith.constant 0.707106769 : f32
      %18 = vector.broadcast %cst_16 : f32 to vector<8x128xf32>
      %19 = arith.mulf %15, %18 : vector<8x128xf32>
      %20 = math.erf %19 : vector<8x128xf32>
      %cst_17 = arith.constant 1.000000e+00 : f32
      %21 = vector.broadcast %cst_17 : f32 to vector<8x128xf32>
      %22 = arith.addf %21, %20 : vector<8x128xf32>
      %23 = arith.mulf %17, %22 : vector<8x128xf32>
      %cst_18 = arith.constant dense<0.000000e+00> : vector<8xf32>
      %24 = vector.multi_reduction <add>, %23, %cst_18 [1] : vector<8x128xf32> to vector<8xf32>
      %25 = vector.shape_cast %24 : vector<8xf32> to vector<8x1xf32>
      %cst_19 = arith.constant 3.125000e-02 : f32
      %26 = vector.broadcast %cst_19 : f32 to vector<8x1xf32>
      %27 = arith.mulf %25, %26 : vector<8x1xf32>
      %28 = arith.mulf %23, %23 : vector<8x128xf32>
      %cst_20 = arith.constant dense<0.000000e+00> : vector<8xf32>
      %29 = vector.multi_reduction <add>, %28, %cst_20 [1] : vector<8x128xf32> to vector<8xf32>
      %30 = vector.shape_cast %29 : vector<8xf32> to vector<8x1xf32>
      %cst_21 = arith.constant 3.125000e-02 : f32
      %31 = vector.broadcast %cst_21 : f32 to vector<8x1xf32>
      %32 = arith.mulf %30, %31 : vector<8x1xf32>
      %33 = arith.mulf %27, %27 : vector<8x1xf32>
      %34 = arith.subf %32, %33 : vector<8x1xf32>
      %cst_22 = arith.constant 0.000000e+00 : f32
      %35 = vector.broadcast %cst_22 : f32 to vector<8x1xf32>
      %36 = arith.maximumf %34, %35 : vector<8x1xf32>
      %37 = vector.broadcast %27 : vector<8x1xf32> to vector<8x128xf32>
      %38 = arith.subf %23, %37 : vector<8x128xf32>
      %cst_23 = arith.constant 9.99999974E-6 : f32
      %39 = vector.broadcast %cst_23 : f32 to vector<8x1xf32>
      %40 = arith.addf %36, %39 : vector<8x1xf32>
      %41 = math.rsqrt %40 : vector<8x1xf32>
      %42 = vector.broadcast %41 : vector<8x1xf32> to vector<8x128xf32>
      %43 = arith.mulf %38, %42 : vector<8x128xf32>
      %c0_24 = arith.constant 0 : index
      %c0_25 = arith.constant 0 : index
      %44 = vector.load %arg5[%c0_24, %c0_25] : memref<1x128xf32, #tpu.memory_space<vmem>>, vector<1x128xf32>
      %45 = vector.broadcast %44 : vector<1x128xf32> to vector<8x128xf32>
      %46 = arith.mulf %43, %45 : vector<8x128xf32>
      %c0_26 = arith.constant 0 : index
      %c0_27 = arith.constant 0 : index
      %47 = vector.load %arg6[%c0_26, %c0_27] : memref<1x128xf32, #tpu.memory_space<vmem>>, vector<1x128xf32>
      %48 = vector.broadcast %47 : vector<1x128xf32> to vector<8x128xf32>
      %49 = arith.addf %46, %48 : vector<8x128xf32>
      %c0_28 = arith.constant 0 : index
      %c0_29 = arith.constant 0 : index
      %50 = vector.load %arg10[%c0_28, %c0_29] : memref<8x128xf32, #tpu.memory_space<vmem>>, vector<8x128xf32>
      tpu.vector_store %arg10[%c0_28, %c0_29], %49 {strides = array<i32>} : memref<8x128xf32, #tpu.memory_space<vmem>>, vector<8x128xf32>,
    } else {
    }
    %c0 = arith.constant 0 : index
    %c0_1 = arith.constant 0 : index
    %3 = vector.load %arg10[%c0, %c0_1] : memref<8x128xf32, #tpu.memory_space<vmem>>, vector<8x128xf32>
    %c0_2 = arith.constant 0 : index
    %c0_3 = arith.constant 0 : index
    %4 = vector.load %arg7[%c0_2, %c0_3] : memref<128x128xf32, #tpu.memory_space<vmem>>, vector<128x128xf32>
    %cst = arith.constant dense<0.000000e+00> : vector<8x128xf32>
    %5 = tpu.matmul %3, %4, %cst {dimension_numbers = #tpu.dot_dimension_numbers<[1], [0], [0], [1], [0, 0, 1, 1], [], []>} : vector<8x128xf32>, vector<128x128xf32>, vector<8x128xf32> -> vector<8x128xf32>
    %c0_4 = arith.constant 0 : index
    %c0_5 = arith.constant 0 : index
    %6 = vector.load %arg8[%c0_4, %c0_5] : memref<1x128xf32, #tpu.memory_space<vmem>>, vector<1x128xf32>
    %7 = vector.broadcast %6 : vector<1x128xf32> to vector<8x128xf32>
    %8 = arith.addf %5, %7 : vector<8x128xf32>
    %c0_6 = arith.constant 0 : index
    %c0_7 = arith.constant 0 : index
    %9 = vector.load %arg9[%c0_6, %c0_7] : memref<8x128xf32, #tpu.memory_space<vmem>>, vector<8x128xf32>
    tpu.vector_store %arg9[%c0_6, %c0_7], %8 {strides = array<i32>} : memref<8x128xf32, #tpu.memory_space<vmem>>, vector<8x128xf32>,
    return
  }
  func.func @transform_0(%arg0: i32, %arg1: i32) -> (i32, i32) {
    %c0_i32 = arith.constant 0 : i32
    %c0_i32_0 = arith.constant 0 : i32
    return %arg0, %c0_i32 : i32, i32
  }
  func.func @transform_1(%arg0: i32, %arg1: i32) -> (i32, i32) {
    %c0_i32 = arith.constant 0 : i32
    %c0_i32_0 = arith.constant 0 : i32
    %c0_i32_1 = arith.constant 0 : i32
    return %c0_i32, %c0_i32_0 : i32, i32
  }
  func.func @transform_2(%arg0: i32, %arg1: i32) -> (i32, i32) {
    %c0_i32 = arith.constant 0 : i32
    %c0_i32_0 = arith.constant 0 : i32
    %c0_i32_1 = arith.constant 0 : i32
    return %c0_i32, %c0_i32_0 : i32, i32
  }
  func.func @transform_3(%arg0: i32, %arg1: i32) -> (i32, i32) {
    %c0_i32 = arith.constant 0 : i32
    %c0_i32_0 = arith.constant 0 : i32
    %c0_i32_1 = arith.constant 0 : i32
    return %c0_i32, %c0_i32_0 : i32, i32
  }
  func.func @transform_4(%arg0: i32, %arg1: i32) -> (i32, i32) {
    %c0_i32 = arith.constant 0 : i32
    %c0_i32_0 = arith.constant 0 : i32
    %c0_i32_1 = arith.constant 0 : i32
    return %c0_i32, %c0_i32_0 : i32, i32
  }
  func.func @transform_5(%arg0: i32, %arg1: i32) -> (i32, i32) {
    %c0_i32 = arith.constant 0 : i32
    %c0_i32_0 = arith.constant 0 : i32
    return %c0_i32, %arg1 : i32, i32
  }
  func.func @transform_6(%arg0: i32, %arg1: i32) -> (i32, i32) {
    %c0_i32 = arith.constant 0 : i32
    %c0_i32_0 = arith.constant 0 : i32
    return %c0_i32, %arg1 : i32, i32
  }
  func.func @transform_7(%arg0: i32, %arg1: i32) -> (i32, i32) {
    %c0_i32 = arith.constant 0 : i32
    return %arg0, %arg1 : i32, i32
  }
}

module attributes {stable_mosaic.version = 11 : i64} {
  func.func @gelu_mlp_kernel(%arg0: i32, %arg1: i32, %arg2: memref<8x128xf32, #tpu.memory_space<vmem>>, %arg3: memref<128x128xf32, #tpu.memory_space<vmem>>, %arg4: memref<1x128xf32, #tpu.memory_space<vmem>>, %arg5: memref<1x128xf32, #tpu.memory_space<vmem>>, %arg6: memref<1x128xf32, #tpu.memory_space<vmem>>, %arg7: memref<128x128xf32, #tpu.memory_space<vmem>>, %arg8: memref<1x128xf32, #tpu.memory_space<vmem>>, %arg9: memref<8x128xf32, #tpu.memory_space<vmem>>, %arg10: memref<8x128xf32, #tpu.memory_space<vmem>>) attributes {dimension_semantics = [#tpu.dimension_semantics<parallel>, #tpu.dimension_semantics<arbitrary>], iteration_bounds = array<i64: 2, 1>, scalar_prefetch = 0 : i64, scratch_operands = 1 : i64, tpu.core_type = #tpu.core_type<tc>, window_params = [{transform_indices = @transform_0, window_bounds = array<i64: 8, 128>}, {pipeline_mode = #tpu.pipeline_mode<synchronous>, transform_indices = @transform_1, window_bounds = array<i64: 128, 128>}, {pipeline_mode = #tpu.pipeline_mode<synchronous>, transform_indices = @transform_2, window_bounds = array<i64: 1, 128>}, {pipeline_mode = #tpu.pipeline_mode<synchronous>, transform_indices = @transform_3, window_bounds = array<i64: 1, 128>}, {pipeline_mode = #tpu.pipeline_mode<synchronous>, transform_indices = @transform_4, window_bounds = array<i64: 1, 128>}, {transform_indices = @transform_5, window_bounds = array<i64: 128, 128>}, {transform_indices = @transform_6, window_bounds = array<i64: 1, 128>}, {transform_indices = @transform_7, window_bounds = array<i64: 8, 128>}]} {
    %c0_i32 = arith.constant 0 : i32
    %0 = arith.cmpi eq, %arg1, %c0_i32 : i32
    %1 = arith.extui %0 : i1 to i32
    %c0_i32_0 = arith.constant 0 : i32
    %2 = arith.cmpi ne, %1, %c0_i32_0 : i32
    scf.if %2 {
      %c0_8 = arith.constant 0 : index
      %c0_9 = arith.constant 0 : index
      %10 = vector.load %arg2[%c0_8, %c0_9] : memref<8x128xf32, #tpu.memory_space<vmem>>, vector<8x128xf32>
      %c0_10 = arith.constant 0 : index
      %c0_11 = arith.constant 0 : index
      %11 = vector.load %arg3[%c0_10, %c0_11] : memref<128x128xf32, #tpu.memory_space<vmem>>, vector<128x128xf32>
      %cst_12 = arith.constant dense<0.000000e+00> : vector<8x128xf32>
      %12 = tpu.matmul %10, %11, %cst_12 {dimension_numbers = #tpu.dot_dimension_numbers<[1], [0], [0], [1], [0, 0, 1, 1], [], []>} : vector<8x128xf32>, vector<128x128xf32>, vector<8x128xf32> -> vector<8x128xf32>
      %c0_13 = arith.constant 0 : index
      %c0_14 = arith.constant 0 : index
      %13 = vector.load %arg4[%c0_13, %c0_14] : memref<1x128xf32, #tpu.memory_space<vmem>>, vector<1x128xf32>
      %14 = vector.broadcast %13 : vector<1x128xf32> to vector<8x128xf32>
      %15 = arith.addf %12, %14 : vector<8x128xf32>
      %cst_15 = arith.constant 5.000000e-01 : f32
      %16 = vector.broadcast %cst_15 : f32 to vector<8x128xf32>
      %17 = arith.mulf %16, %15 : vector<8x128xf32>
      %cst_16 = arith.constant 0.707106769 : f32
      %18 = vector.broadcast %cst_16 : f32 to vector<8x128xf32>
      %19 = arith.mulf %15, %18 : vector<8x128xf32>
      %20 = math.erf %19 : vector<8x128xf32>
      %cst_17 = arith.constant 1.000000e+00 : f32
      %21 = vector.broadcast %cst_17 : f32 to vector<8x128xf32>
      %22 = arith.addf %21, %20 : vector<8x128xf32>
      %23 = arith.mulf %17, %22 : vector<8x128xf32>
      %cst_18 = arith.constant dense<0.000000e+00> : vector<8xf32>
      %24 = vector.multi_reduction <add>, %23, %cst_18 [1] : vector<8x128xf32> to vector<8xf32>
      %25 = vector.shape_cast %24 : vector<8xf32> to vector<8x1xf32>
      %cst_19 = arith.constant 3.125000e-02 : f32
      %26 = vector.broadcast %cst_19 : f32 to vector<8x1xf32>
      %27 = arith.mulf %25, %26 : vector<8x1xf32>
      %28 = arith.mulf %23, %23 : vector<8x128xf32>
      %cst_20 = arith.constant dense<0.000000e+00> : vector<8xf32>
      %29 = vector.multi_reduction <add>, %28, %cst_20 [1] : vector<8x128xf32> to vector<8xf32>
      %30 = vector.shape_cast %29 : vector<8xf32> to vector<8x1xf32>
      %cst_21 = arith.constant 3.125000e-02 : f32
      %31 = vector.broadcast %cst_21 : f32 to vector<8x1xf32>
      %32 = arith.mulf %30, %31 : vector<8x1xf32>
      %33 = arith.mulf %27, %27 : vector<8x1xf32>
      %34 = arith.subf %32, %33 : vector<8x1xf32>
      %cst_22 = arith.constant 0.000000e+00 : f32
      %35 = vector.broadcast %cst_22 : f32 to vector<8x1xf32>
      %36 = arith.maximumf %34, %35 : vector<8x1xf32>
      %37 = vector.broadcast %27 : vector<8x1xf32> to vector<8x128xf32>
      %38 = arith.subf %23, %37 : vector<8x128xf32>
      %cst_23 = arith.constant 9.99999974E-6 : f32
      %39 = vector.broadcast %cst_23 : f32 to vector<8x1xf32>
      %40 = arith.addf %36, %39 : vector<8x1xf32>
      %41 = math.rsqrt %40 : vector<8x1xf32>
      %42 = vector.broadcast %41 : vector<8x1xf32> to vector<8x128xf32>
      %43 = arith.mulf %38, %42 : vector<8x128xf32>
      %c0_24 = arith.constant 0 : index
      %c0_25 = arith.constant 0 : index
      %44 = vector.load %arg5[%c0_24, %c0_25] : memref<1x128xf32, #tpu.memory_space<vmem>>, vector<1x128xf32>
      %45 = vector.broadcast %44 : vector<1x128xf32> to vector<8x128xf32>
      %46 = arith.mulf %43, %45 : vector<8x128xf32>
      %c0_26 = arith.constant 0 : index
      %c0_27 = arith.constant 0 : index
      %47 = vector.load %arg6[%c0_26, %c0_27] : memref<1x128xf32, #tpu.memory_space<vmem>>, vector<1x128xf32>
      %48 = vector.broadcast %47 : vector<1x128xf32> to vector<8x128xf32>
      %49 = arith.addf %46, %48 : vector<8x128xf32>
      %c0_28 = arith.constant 0 : index
      %c0_29 = arith.constant 0 : index
      %50 = vector.load %arg10[%c0_28, %c0_29] : memref<8x128xf32, #tpu.memory_space<vmem>>, vector<8x128xf32>
      tpu.vector_store %arg10[%c0_28, %c0_29], %49 {strides = array<i32>} : memref<8x128xf32, #tpu.memory_space<vmem>>, vector<8x128xf32>,
    } else {
    }
    %c0 = arith.constant 0 : index
    %c0_1 = arith.constant 0 : index
    %3 = vector.load %arg10[%c0, %c0_1] : memref<8x128xf32, #tpu.memory_space<vmem>>, vector<8x128xf32>
    %c0_2 = arith.constant 0 : index
    %c0_3 = arith.constant 0 : index
    %4 = vector.load %arg7[%c0_2, %c0_3] : memref<128x128xf32, #tpu.memory_space<vmem>>, vector<128x128xf32>
    %cst = arith.constant dense<0.000000e+00> : vector<8x128xf32>
    %5 = tpu.matmul %3, %4, %cst {dimension_numbers = #tpu.dot_dimension_numbers<[1], [0], [0], [1], [0, 0, 1, 1], [], []>} : vector<8x128xf32>, vector<128x128xf32>, vector<8x128xf32> -> vector<8x128xf32>
    %c0_4 = arith.constant 0 : index
    %c0_5 = arith.constant 0 : index
    %6 = vector.load %arg8[%c0_4, %c0_5] : memref<1x128xf32, #tpu.memory_space<vmem>>, vector<1x128xf32>
    %7 = vector.broadcast %6 : vector<1x128xf32> to vector<8x128xf32>
    %8 = arith.addf %5, %7 : vector<8x128xf32>
    %c0_6 = arith.constant 0 : index
    %c0_7 = arith.constant 0 : index
    %9 = vector.load %arg9[%c0_6, %c0_7] : memref<8x128xf32, #tpu.memory_space<vmem>>, vector<8x128xf32>
    tpu.vector_store %arg9[%c0_6, %c0_7], %8 {strides = array<i32>} : memref<8x128xf32, #tpu.memory_space<vmem>>, vector<8x128xf32>,
    return
  }
  func.func @transform_0(%arg0: i32, %arg1: i32) -> (i32, i32) {
    %c0_i32 = arith.constant 0 : i32
    %c0_i32_0 = arith.constant 0 : i32
    return %arg0, %c0_i32 : i32, i32
  }
  func.func @transform_1(%arg0: i32, %arg1: i32) -> (i32, i32) {
    %c0_i32 = arith.constant 0 : i32
    %c0_i32_0 = arith.constant 0 : i32
    %c0_i32_1 = arith.constant 0 : i32
    return %c0_i32, %c0_i32_0 : i32, i32
  }
  func.func @transform_2(%arg0: i32, %arg1: i32) -> (i32, i32) {
    %c0_i32 = arith.constant 0 : i32
    %c0_i32_0 = arith.constant 0 : i32
    %c0_i32_1 = arith.constant 0 : i32
    return %c0_i32, %c0_i32_0 : i32, i32
  }
  func.func @transform_3(%arg0: i32, %arg1: i32) -> (i32, i32) {
    %c0_i32 = arith.constant 0 : i32
    %c0_i32_0 = arith.constant 0 : i32
    %c0_i32_1 = arith.constant 0 : i32
    return %c0_i32, %c0_i32_0 : i32, i32
  }
  func.func @transform_4(%arg0: i32, %arg1: i32) -> (i32, i32) {
    %c0_i32 = arith.constant 0 : i32
    %c0_i32_0 = arith.constant 0 : i32
    %c0_i32_1 = arith.constant 0 : i32
    return %c0_i32, %c0_i32_0 : i32, i32
  }
  func.func @transform_5(%arg0: i32, %arg1: i32) -> (i32, i32) {
    %c0_i32 = arith.constant 0 : i32
    %c0_i32_0 = arith.constant 0 : i32
    return %c0_i32, %arg1 : i32, i32
  }
  func.func @transform_6(%arg0: i32, %arg1: i32) -> (i32, i32) {
    %c0_i32 = arith.constant 0 : i32
    %c0_i32_0 = arith.constant 0 : i32
    return %c0_i32, %arg1 : i32, i32
  }
  func.func @transform_7(%arg0: i32, %arg1: i32) -> (i32, i32) {
    %c0_i32 = arith.constant 0 : i32
    return %arg0, %arg1 : i32, i32
  }
}

</mosaic_0001>

<bundles_post_ra>
// kernel: tpu_custom_call.1
= control target key start
LH: loop header
LB: loop body
LE: loop exit
PB: predicated region body
PF: predicated region fallthrough
CT: control target
= control target key end

     0   :  { %12 = vsyncpa [#allocation4], 0  ;;  %s1355_s0 = inlined_call_operand.vmem [shape: f32[16,128], index: 0, kind: input, shape index: {}]   ;;  %s1356_s1 = inlined_call_operand.vmem [shape: f32[128,128], index: 1, kind: input, shape index: {}]   ;;  %s1357_s2 = inlined_call_operand.vmem [shape: f32[1,128], index: 2, kind: input, shape index: {}]   ;;  %s1358_s3 = inlined_call_operand.vmem [shape: f32[1,128], index: 3, kind: input, shape index: {}]   ;;  %s1359_s4 = inlined_call_operand.hbm [shape: f32[1,128], index: 4, kind: input, shape index: {}]   ;;  %s1360_s5 = inlined_call_operand.vmem [shape: f32[128,16], index: 5, kind: input, shape index: {}]   ;;  %s1361_s6 = inlined_call_operand.vmem [shape: f32[1,16], index: 6, kind: input, shape index: {}]   ;;  %s1362_s7 = inlined_call_operand.hbm [shape: f32[16,16], index: 7, kind: output, shape index: {}]  }
   0x1   :  { %13 = vsyncpa [#allocation5], 0 }
   0x2   :  { %15 = vsyncpa [#allocation5 + $0x1], 0  ;;  %s1084_s24 = smov 0   ;;  %s1086_s25 = smov 0  }
   0x3   :  { %s1088_s26 = smov 0   ;;  %s1090_s27 = smov 0  }
   0x4   :  { %s1092_s28 = smov 0   ;;  %s1094_s29 = smov 0  }
   0x5 LB: > { %s683_s30 = sadd.s32 4294967295, %s1037_s29   ;;  %s684_s8 = sadd.s32 4294967294, %s1037_s29   ;;  %s1037_s29 = sphi %s1094_s29, %s21_s29   ;;  %s1033_s28 = sphi %s1092_s28, %s1380_s28   ;;  %s1029_s27 = sphi %s1090_s27, %s1379_s27   ;;  %s1025_s26 = sphi %s1088_s26, %s1378_s26   ;;  %s1021_s25 = sphi %s1086_s25, %s1377_s25   ;;  %s1017_s24 = sphi %s1084_s24, %s1376_s24  }
   0x6   : > { %s33_s9 = sadd.s32 1, %s1033_s28  ;;  %s204_s10 = sadd.s32 1, %s1025_s26 }
   0x7   : > { %p35_p0 = scmp.ge.s32.totalorder %s33_s9, 2  ;;  %p214_p1 = scmp.ne.s32.totalorder %s1025_s26, %s1021_s25 }
   0x8   : > { %p215_p2 = scmp.eq.s32.totalorder %s683_s30, 1  ;;  %p220_p3 = scmp.ne.s32.totalorder %s1021_s25, %s1017_s24 }
   0x9   : > { %s1382_s9 = smov (%p35_p0, %s33_s9), 0  ;;  %p221_p5 = scmp.eq.s32.totalorder %s684_s8, 1 }
   0xa   : > { %p1124_p4 = por %p215_p2, %p214_p1  ;;  %s199_s12 = ssub.s32 %s1033_s28, %s1382_s9 }
   0xb   : > { %p685_p6 = scmp.ge.s32.totalorder %s1037_s29, 1  ;;  %p202_p7 = scmp.eq.s32.totalorder %s199_s12, 0 }
   0xc   : > { %s1367_s11 = scalar_select %p1124_p4, 1, 0 }
   0xd   : > { %p1131_p8 = por %p221_p5, %p220_p3  ;;  %p228_p9 = scmp.lt.s32.totalorder %s1037_s29, 3 }
   0xe   : > { %s1137_s14 = scalar_select %p202_p7, %s1025_s26, %s204_s10  }
   0xf   : > { %s1368_s13 = scalar_select %p1131_p8, 1, 0 }
  0x10   : > { %p1139_p10 = pnand %p685_p6, %p228_p9  ;;  %p1143_p11 = scmp.eq.s32.totalorder %s683_s30, 0 }
  0x11   : > { %s1039_s17 = smov [#allocation3]   ;;  %s927_s22 = scalar_lea.hbm %s1359_s4, 16 }
  0x12   : > { %s1369_s15 = scalar_select %p1139_p10, 1, 0 }
  0x13   : > { %s1370_s16 = scalar_select %p1143_p11, 1, 0 }
  0x14   : > { %p860_p12 = pneg %p1139_p10  ;;  %s250_s18 = sshll.u32 %s1039_s17, 4  ;;  %s251_s18 = int_to_ptr.vmem [resolvable:$true] %s250_s18 }
  0x15   : > { %p928_p0 = scmp.ne.s32.totalorder %s1359_s4, %s927_s22  ;;  %p934_p5 = scmp.lt.u32.totalorder %s927_s22, %s1359_s4 }
  0x16   : > { %p1151_p13 = pnand %p1143_p11, %p860_p12 }
  0x18   : > { %p929_p1 = pneg %p1151_p13 }
  0x1a   : > { %p930_p2 = pnand %p929_p1, %p928_p0 }
  0x1c   : > { %p931_p3 = pneg %p930_p2 }
  0x1e   : > { %p936_p6 = pnand %p934_p5, %p931_p3 }
  0x20   : > { %939 = shalt.err (!%p936_p6)
}
  0x21   : > { %s940_s12 = scalar_lea.vmem %s251_s18, 16  ;;  %s947_s17 = scalar_lea.vmem %s251_s18, 32 }
  0x22   : > { %p941_p7 = scmp.ne.s32.totalorder %s251_s18, %s940_s12  ;;  %p948_p8 = scmp.lt.s32.totalorder %s251_s18, %s251_s18 }
  0x23   : > { %p949_p4 = scmp.lt.s32.totalorder %s947_s17, %s940_s12 }
  0x24   : > { %p943_p9 = pnand %p941_p7, %p929_p1 }
  0x25   : > { %p950_p11 = por %p949_p4, %p948_p8 }
  0x26   : > { %p944_p12 = pneg %p943_p9 }
  0x28   : > { %p951_p10 = pnand %p950_p11, %p944_p12 }
  0x2a   : > { %954 = shalt.err (!%p951_p10)
}
  0x2b   : > { %863 = dma.hbm_to_vmem [thread:$0]  (!%p1151_p13), %s1359_s4, 16, %s251_s18, [#allocation4]  }
  0x2c   : > { %p1372_p0 = scmp.ne.s32.totalorder %s1369_s15, 0 }
  0x2d   : > { %p1373_p2 = scmp.ne.s32.totalorder (!%p1372_p0), %s1370_s16, 0 }
  0x2e   : > { %283 = sbr.rel (%p1372_p0) target bundleno = 719 (0x2cf), region = 48 }
  0x35   : > { %1008 = dma.done.wait (%p1373_p2), [#allocation4], 16  }
  0x36   : > { %1010 = vsyncadd (%p1373_p2), [#allocation4], 4294967280  ;;  %v1040_v0 = vmov 0.0|0.0   ;;  %vm1041_vm0 = vmmov 0   ;;  %v1042_v1 = vmov 0.0   ;;  %v337_v2 = vld [vmem:[%s1356_s1] sm:$0xff] }
  0x37   : > { %806 = vmatprep.subr.bf16.mxu0 %v1040_v0  ;;  %768 = vmatprep.mubr.msk.f32.mxu0 %vm1041_vm0, %v1042_v1  ;;  %v338_v3 = vld [vmem:[%s1356_s1 + $0x8] sm:$0xff]  ;;  %v339_v4 = vld [vmem:[%s1356_s1 + $0x10] sm:$0xff]  ;;  %v340_v6 = vld [vmem:[%s1356_s1 + $0x18] sm:$0xff]  ;;  %p321_p4 = scmp.lt.s32.totalorder %s1029_s27, 1  ;;  %s318_s10 = sand.u32 1, %s1021_s25  }
  0x38   : > { %830 = vmatprep.subr.bf16.mxu1 %v1040_v0  ;;  %803 = vmatprep.mubr.msk.f32.mxu1 %vm1041_vm0, %v1042_v1  ;;  %v807_v5 = vpack.c.bf16 %v338_v3, %v337_v2  ;;  %v810_v7 = vpack.c.bf16 %v340_v6, %v339_v4  ;;  %v341_v8 = vld [vmem:[%s1356_s1 + $0x20] sm:$0xff]  ;;  %v342_v9 = vld [vmem:[%s1356_s1 + $0x28] sm:$0xff]  ;;  %v343_v11 = vld [vmem:[%s1356_s1 + $0x30] sm:$0xff]  ;;  %s692_s12 = sshll.u32 %s318_s10, 3  ;;  %s699_s21 = sshll.u32 %s1029_s27, 7 }
  0x39   : > { %v813_v10 = vpack.c.bf16 %v342_v9, %v341_v8  ;;  %v344_v12 = vld [vmem:[%s1356_s1 + $0x38] sm:$0xff]  ;;  %v345_v14 = vld [vmem:[%s1356_s1 + $0x40] sm:$0xff]  ;;  %v346_v15 = vld [vmem:[%s1356_s1 + $0x48] sm:$0xff]  ;;  %s322_s15 = scalar_select %p321_p4, %s1029_s27, 1 }
  0x3a   : > { %808 = vmatpush3.bf16.msra.mxu0 %v807_v5  ;;  %v816_v13 = vpack.c.bf16 %v344_v12, %v343_v11  ;;  %v819_v16 = vpack.c.bf16 %v346_v15, %v345_v14  ;;  %v347_v17 = vld [vmem:[%s1356_s1 + $0x50] sm:$0xff]  ;;  %v348_v18 = vld [vmem:[%s1356_s1 + $0x58] sm:$0xff]  ;;  %v349_v20 = vld [vmem:[%s1356_s1 + $0x60] sm:$0xff]  ;;  %s320_s19 = scalar_lea.vmem [#allocation6], %s692_s12  ;;  %s1308_s23 = scalar_lea.hbm %s1362_s7, %s699_s21 }
  0x3b   : > { %809 = vmatprep.subr.bf16.mxu0 %v1040_v0  ;;  %v822_v19 = vpack.c.bf16 %v348_v18, %v347_v17  ;;  %v350_v21 = vld [vmem:[%s1356_s1 + $0x68] sm:$0xff]  ;;  %v351_v23 = vld [vmem:[%s1356_s1 + $0x70] sm:$0xff]  ;;  %v352_v24 = vld [vmem:[%s1356_s1 + $0x78] sm:$0xff]  ;;  %s693_s8 = sshll.u32 %s322_s15, 3  ;;  %s576_s18 = sshll.u32 %s320_s19, 4  ;;  %s1310_s18 = int_to_ptr.vmem [resolvable:$true] %s576_s18 }
  0x3c   : > { %v825_v22 = vpack.c.bf16 %v350_v21, %v349_v20  ;;  %v828_v25 = vpack.c.bf16 %v352_v24, %v351_v23  ;;  %s324_s17 = scalar_lea.vmem %s1355_s0, %s693_s8  ;;  %v467_v27 = vld [vmem:[%s1360_s5] sm:$0xff]  ;;  %v468_v28 = vld [vmem:[%s1360_s5 + $0x8] sm:$0xff]  ;;  %v469_v40 = vld [vmem:[%s1360_s5 + $0x10] sm:$0xff]  ;;  %s562_s16 = scalar_lea.sflag [#allocation5], %s318_s10 }
  0x3d   : > { %v336_v26 = vld [vmem:[%s324_s17] sm:$0xff]  ;;  %v831_v29 = vpack.c.bf16 %v468_v28, %v467_v27  ;;  %v470_v41 = vld [vmem:[%s1360_s5 + $0x18] sm:$0xff]  ;;  %v472_v44 = vld [vmem:[%s1360_s5 + $0x28] sm:$0xff]  ;;  %s955_s30 = scalar_lea.vmem %s1310_s18, 128  ;;  %p1374_p10 = scmp.ne.s32.totalorder %s1367_s11, 0 }
  0x3e   : > { %811 = vmatpush3.bf16.msra.mxu0 %v810_v7  ;;  %v694_v30 = vld [vmem:[%s1357_s2] ss:$0 sm:$0xff]  ;;  %v834_v42 = vpack.c.bf16 %v470_v41, %v469_v40  ;;  %v473_v46 = vld [vmem:[%s1360_s5 + $0x30] sm:$0xff]  ;;  %v474_v47 = vld [vmem:[%s1360_s5 + $0x38] sm:$0xff]  ;;  %p956_p8 = scmp.ne.s32.totalorder %s1310_s18, %s955_s30  ;;  %s1043_s27 = smov [#allocation6]  }
  0x3f   : > { %812 = vmatprep.subr.bf16.mxu0 %v1040_v0  ;;  %832 = vmatpush3.bf16.msra.mxu1 %v831_v29  ;;  %v471_v43 = vld [vmem:[%s1360_s5 + $0x20] sm:$0xff]  ;;  %v840_v48 = vpack.c.bf16 %v474_v47, %v473_v46  ;;  %v476_v50 = vld [vmem:[%s1360_s5 + $0x48] sm:$0xff]  ;;  %v477_v52 = vld [vmem:[%s1360_s5 + $0x50] sm:$0xff]  ;;  %s959_s8 = sshll.u32 %s1043_s27, 4  ;;  %s960_s8 = int_to_ptr.vmem [resolvable:$false] %s959_s8 }
  0x40   : > { %833 = vmatprep.subr.bf16.mxu1 %v1040_v0  ;;  %v837_v45 = vpack.c.bf16 %v472_v44, %v471_v43  ;;  %v475_v49 = vld [vmem:[%s1360_s5 + $0x40] sm:$0xff]  ;;  %v478_v53 = vld [vmem:[%s1360_s5 + $0x58] sm:$0xff]  ;;  %v480_v56 = vld [vmem:[%s1360_s5 + $0x68] sm:$0xff]  ;;  %p957_p11 = pnand %p956_p8, %p1374_p10  ;;  %s961_s12 = scalar_lea.vmem %s960_s8, 256 }
  0x41   : > { %v843_v51 = vpack.c.bf16 %v476_v50, %v475_v49  ;;  %v846_v54 = vpack.c.bf16 %v478_v53, %v477_v52  ;;  %v479_v55 = vld [vmem:[%s1360_s5 + $0x60] sm:$0xff]  ;;  %v481_v58 = vld [vmem:[%s1360_s5 + $0x70] sm:$0xff]  ;;  %v482_v59 = vld [vmem:[%s1360_s5 + $0x78] sm:$0xff]  ;;  %p962_p1 = scmp.lt.s32.totalorder %s1310_s18, %s960_s8  ;;  %p963_p3 = scmp.lt.s32.totalorder %s961_s12, %s955_s30 }
  0x42   : > { %814 = vmatpush3.bf16.msra.mxu0 %v813_v10  ;;  %v849_v57 = vpack.c.bf16 %v480_v56, %v479_v55  ;;  %v852_v60 = vpack.c.bf16 %v482_v59, %v481_v58  ;;  %v695_v8 = vld [vmem:[%s1358_s3] ss:$0 sm:$0xff]  ;;  %p958_p13 = pneg %p957_p11 }
  0x43   : > { %815 = vmatprep.subr.bf16.mxu0 %v1040_v0  ;;  %835 = vmatpush3.bf16.msra.mxu1 %v834_v42  ;;  %v697_v12 = vld [vmem:[%s1361_s6] ss:$0 sm:$0xff]  ;;  %p964_p5 = por %p963_p3, %p962_p1 }
  0x44   : > { %836 = vmatprep.subr.bf16.mxu1 %v1040_v0 }
  0x45   : > { %p965_p6 = pnand %p964_p5, %p958_p13 }
  0x46   : > { %817 = vmatpush3.bf16.msra.mxu0 %v816_v13 }
  0x47   : > { %818 = vmatprep.subr.bf16.mxu0 %v1040_v0  ;;  %838 = vmatpush3.bf16.msra.mxu1 %v837_v45 }
  0x48   : > { %839 = vmatprep.subr.bf16.mxu1 %v1040_v0 }
  0x4a   : > { %820 = vmatpush3.bf16.msra.mxu0 %v819_v16 }
  0x4b   : > { %821 = vmatprep.subr.bf16.mxu0 %v1040_v0  ;;  %841 = vmatpush3.bf16.msra.mxu1 %v840_v48 }
  0x4c   : > { %842 = vmatprep.subr.bf16.mxu1 %v1040_v0 }
  0x4e   : > { %823 = vmatpush3.bf16.msra.mxu0 %v822_v19 }
  0x4f   : > { %824 = vmatprep.subr.bf16.mxu0 %v1040_v0  ;;  %844 = vmatpush3.bf16.msra.mxu1 %v843_v51 }
  0x50   : > { %845 = vmatprep.subr.bf16.mxu1 %v1040_v0 }
  0x52   : > { %826 = vmatpush3.bf16.msra.mxu0 %v825_v22 }
  0x53   : > { %827 = vmatprep.subr.bf16.mxu0 %v1040_v0  ;;  %847 = vmatpush3.bf16.msra.mxu1 %v846_v54 }
  0x54   : > { %848 = vmatprep.subr.bf16.mxu1 %v1040_v0 }
  0x56   : > { %829 = vmatpush3.bf16.msra.mxu0 %v828_v25 }
  0x57   : > { %850 = vmatpush3.bf16.msra.mxu1 %v849_v57 }
  0x58   : > { %851 = vmatprep.subr.bf16.mxu1 %v1040_v0  ;;  %v696_v0 = vld [vmem:[#allocation3] ss:$0 sm:$0xff] }
  0x59   : > { %769 = vmatmul.mubr.f32.vlgmr.msra.gmra.mrb[0].mxu0 %v336_v26 }
  0x5b   : > { %853 = vmatpush3.bf16.msra.mxu1 %v852_v60 }
 0x12c   : > { %v426_v31 = vpop.f32.mrb[0].mxu0 }
 0x12d   : > { %v427_v32 = vadd.f32 %v694_v30, %v426_v31  ;;  %v770_v33 = vpop.f32.mrb[1].mxu0 }
 0x12f   : > { %v431_v34 = vmul.f32 0.70710677, %v427_v32  ;;  %v430_v36 = vmul.f32 0.5, %v427_v32 }
 0x131   : > { %923 = verf.f32 %v431_v34 }
 0x13b   : > { %v924_v35 = vpop.eup %923 }
 0x13c   : > { %v433_v37 = vadd.f32 1.0, %v924_v35 }
 0x13e   : > { %v434_v38 = vmul.f32 %v433_v37, %v430_v36 }
 0x140   : > { %435 = vadd.xlane.f32.xlu0 %v434_v38  ;;  %v438_v39 = vmul.f32 %v434_v38, %v434_v38 }
 0x144   : > { %439 = vadd.xlane.f32.xlu0 %v438_v39 }
 0x1cd   : > { %v436_v61 = vpop.xlane.xlu0 %435 }
 0x1ce   : > { %v437_v62 = vmul.f32 0.03125, %v436_v61 }
 0x1d0   : > { %v442_v1 = vmul.f32 %v437_v62, %v437_v62  ;;  %v445_v6 = vsub.f32 %v434_v38, %v437_v62 }
 0x1d1   : > { %v440_v63 = vpop.xlane.xlu0 %439 }
 0x1d2   : > { %v441_v2 = vmul.f32 0.03125, %v440_v63 }
 0x1d4   : > { %v443_v3 = vsub.f32 %v441_v2, %v442_v1 }
 0x1d6   : > { %v444_v4 = vmax.f32 %v443_v3, 0.0 }
 0x1d8   : > { %v446_v5 = vadd.f32 1e-05, %v444_v4 }
 0x1da   : > { %925 = vrsqrt.f32 %v446_v5 }
 0x1e4   : > { %v926_v7 = vpop.eup %925 }
 0x1e5   : > { %v448_v9 = vmul.f32 %v926_v7, %v445_v6 }
 0x1e7   : > { %v456_v10 = vmul.f32 %v695_v8, %v448_v9 }
 0x1e9   : > { %v464_v11 = vadd.f32 %v696_v0, %v456_v10 }
 0x1eb   : > { %804 = vmatmul.mubr.f32.vlgmr.msra.gmra.mrb[0].mxu1 %v464_v11 }
 0x2be   : > { %v556_v13 = vpop.f32.mrb[0].mxu1 }
 0x2bf   : > { %v557_v14 = vadd.f32 %v697_v12, %v556_v13  ;;  %v805_v15 = vpop.f32.mrb[1].mxu1 }
 0x2c1   : > { %560 = vst [vmem:[%s320_s19] sm:$0xff] %v557_v14 }
 0x2c2   : > { %968 = shalt.err (!%p965_p6)
}
 0x2c3   : > { %s969_s10 = scalar_lea.hbm %s1308_s23, 128  ;;  %s973_s21 = scalar_lea.hbm %s1362_s7, 256 }
 0x2c4   : > { %p970_p7 = scmp.ne.s32.totalorder %s1308_s23, %s969_s10  ;;  %p974_p0 = scmp.lt.u32.totalorder %s1308_s23, %s1362_s7 }
 0x2c5   : > { %p975_p2 = scmp.lt.u32.totalorder %s973_s21, %s969_s10  ;;  %p977_p8 = scmp.lt.u32.totalorder %s969_s10, %s1308_s23 }
 0x2c6   : > { %p971_p9 = pnand %p970_p7, %p1374_p10 }
 0x2c7   : > { %p976_p4 = por %p975_p2, %p974_p0 }
 0x2c8   : > { %p972_p12 = pneg %p971_p9 }
 0x2c9   : > { %p978_p11 = por %p977_p8, %p976_p4 }
 0x2cb   : > { %p979_p13 = pnand %p978_p11, %p972_p12 }
 0x2cd   : > { %982 = shalt.err (!%p979_p13)
}
 0x2ce   : > { %858 = dma.vmem_to_hbm [thread:$0]  (%p1374_p10), %s1310_s18, 128, %s1308_s23, %s562_s16  }
 0x2cf PF: > { %p870_p1 = scmp.ge.s32.totalorder %s1037_s29, 2  ;;  %s588_s22 = sand.u32 1, %s1017_s24  }
 0x2d0   : > { %p1375_p3 = scmp.ne.s32.totalorder %s1368_s13, 0  ;;  %s589_s30 = scalar_lea.sflag [#allocation5], %s588_s22 }
 0x2d2   : > { %p865_p5 = pnand %p870_p1, %p1375_p3 }
 0x2d4   : > { %1012 = dma.done.wait (!%p865_p5), %s589_s30, 128  }
 0x2d5   : > { %1014 = vsyncadd (!%p865_p5), %s589_s30, 4294967168  ;;  %s21_s29 = sadd.s32 1, %s1037_s29   ;;  %s1376_s24 = smov %s1021_s25 }
 0x2d6   : > { %p18_p6 = scmp.ge.s32.totalorder %s21_s29, 4   ;;  %s1377_s25 = smov %s1025_s26 }
 0x2d7   : > { %s1378_s26 = smov %s1137_s14  ;;  %s1379_s27 = smov %s1033_s28 }
 0x2d8   : > { %s1380_s28 = smov %s1382_s9  ;;  %20 = sbr.rel (!%p18_p6) target bundleno = 5 (0x5), region = 98 }
 0x2df   :  { %594 = vsyncpa [#allocation4], 1 }
 0x2e0   :  { %596 = vsyncpa [#allocation4 + $0x1], 1 }
 0x2e1   :  { %597 = vsyncpa [#allocation5], 1 }
 0x2e2   :  { %599 = vsyncpa [#allocation5 + $0x1], 1 }

// kernel: tpu_custom_call.1
= control target key start
LH: loop header
LB: loop body
LE: loop exit
PB: predicated region body
PF: predicated region fallthrough
CT: control target
= control target key end

     0   :  { %12 = vsyncpa [#allocation4], 0  ;;  %s1355_s0 = inlined_call_operand.vmem [shape: f32[16,128], index: 0, kind: input, shape index: {}]   ;;  %s1356_s1 = inlined_call_operand.vmem [shape: f32[128,128], index: 1, kind: input, shape index: {}]   ;;  %s1357_s2 = inlined_call_operand.vmem [shape: f32[1,128], index: 2, kind: input, shape index: {}]   ;;  %s1358_s3 = inlined_call_operand.vmem [shape: f32[1,128], index: 3, kind: input, shape index: {}]   ;;  %s1359_s4 = inlined_call_operand.hbm [shape: f32[1,128], index: 4, kind: input, shape index: {}]   ;;  %s1360_s5 = inlined_call_operand.vmem [shape: f32[128,16], index: 5, kind: input, shape index: {}]   ;;  %s1361_s6 = inlined_call_operand.vmem [shape: f32[1,16], index: 6, kind: input, shape index: {}]   ;;  %s1362_s7 = inlined_call_operand.hbm [shape: f32[16,16], index: 7, kind: output, shape index: {}]  }
   0x1   :  { %13 = vsyncpa [#allocation5], 0 }
   0x2   :  { %15 = vsyncpa [#allocation5 + $0x1], 0  ;;  %s1084_s24 = smov 0   ;;  %s1086_s25 = smov 0  }
   0x3   :  { %s1088_s26 = smov 0   ;;  %s1090_s27 = smov 0  }
   0x4   :  { %s1092_s28 = smov 0   ;;  %s1094_s29 = smov 0  }
   0x5 LB: > { %s683_s30 = sadd.s32 4294967295, %s1037_s29   ;;  %s684_s8 = sadd.s32 4294967294, %s1037_s29   ;;  %s1037_s29 = sphi %s1094_s29, %s21_s29   ;;  %s1033_s28 = sphi %s1092_s28, %s1380_s28   ;;  %s1029_s27 = sphi %s1090_s27, %s1379_s27   ;;  %s1025_s26 = sphi %s1088_s26, %s1378_s26   ;;  %s1021_s25 = sphi %s1086_s25, %s1377_s25   ;;  %s1017_s24 = sphi %s1084_s24, %s1376_s24  }
   0x6   : > { %s33_s9 = sadd.s32 1, %s1033_s28  ;;  %s204_s10 = sadd.s32 1, %s1025_s26 }
   0x7   : > { %p35_p0 = scmp.ge.s32.totalorder %s33_s9, 2  ;;  %p214_p1 = scmp.ne.s32.totalorder %s1025_s26, %s1021_s25 }
   0x8   : > { %p215_p2 = scmp.eq.s32.totalorder %s683_s30, 1  ;;  %p220_p3 = scmp.ne.s32.totalorder %s1021_s25, %s1017_s24 }
   0x9   : > { %s1382_s9 = smov (%p35_p0, %s33_s9), 0  ;;  %p221_p5 = scmp.eq.s32.totalorder %s684_s8, 1 }
   0xa   : > { %p1124_p4 = por %p215_p2, %p214_p1  ;;  %s199_s12 = ssub.s32 %s1033_s28, %s1382_s9 }
   0xb   : > { %p685_p6 = scmp.ge.s32.totalorder %s1037_s29, 1  ;;  %p202_p7 = scmp.eq.s32.totalorder %s199_s12, 0 }
   0xc   : > { %s1367_s11 = scalar_select %p1124_p4, 1, 0 }
   0xd   : > { %p1131_p8 = por %p221_p5, %p220_p3  ;;  %p228_p9 = scmp.lt.s32.totalorder %s1037_s29, 3 }
   0xe   : > { %s1137_s14 = scalar_select %p202_p7, %s1025_s26, %s204_s10  }
   0xf   : > { %s1368_s13 = scalar_select %p1131_p8, 1, 0 }
  0x10   : > { %p1139_p10 = pnand %p685_p6, %p228_p9  ;;  %p1143_p11 = scmp.eq.s32.totalorder %s683_s30, 0 }
  0x11   : > { %s1039_s17 = smov [#allocation3]   ;;  %s927_s22 = scalar_lea.hbm %s1359_s4, 16 }
  0x12   : > { %s1369_s15 = scalar_select %p1139_p10, 1, 0 }
  0x13   : > { %s1370_s16 = scalar_select %p1143_p11, 1, 0 }
  0x14   : > { %p860_p12 = pneg %p1139_p10  ;;  %s250_s18 = sshll.u32 %s1039_s17, 4  ;;  %s251_s18 = int_to_ptr.vmem [resolvable:$true] %s250_s18 }
  0x15   : > { %p928_p0 = scmp.ne.s32.totalorder %s1359_s4, %s927_s22  ;;  %p934_p5 = scmp.lt.u32.totalorder %s927_s22, %s1359_s4 }
  0x16   : > { %p1151_p13 = pnand %p1143_p11, %p860_p12 }
  0x18   : > { %p929_p1 = pneg %p1151_p13 }
  0x1a   : > { %p930_p2 = pnand %p929_p1, %p928_p0 }
  0x1c   : > { %p931_p3 = pneg %p930_p2 }
  0x1e   : > { %p936_p6 = pnand %p934_p5, %p931_p3 }
  0x20   : > { %939 = shalt.err (!%p936_p6)
}
  0x21   : > { %s940_s12 = scalar_lea.vmem %s251_s18, 16  ;;  %s947_s17 = scalar_lea.vmem %s251_s18, 32 }
  0x22   : > { %p941_p7 = scmp.ne.s32.totalorder %s251_s18, %s940_s12  ;;  %p948_p8 = scmp.lt.s32.totalorder %s251_s18, %s251_s18 }
  0x23   : > { %p949_p4 = scmp.lt.s32.totalorder %s947_s17, %s940_s12 }
  0x24   : > { %p943_p9 = pnand %p941_p7, %p929_p1 }
  0x25   : > { %p950_p11 = por %p949_p4, %p948_p8 }
  0x26   : > { %p944_p12 = pneg %p943_p9 }
  0x28   : > { %p951_p10 = pnand %p950_p11, %p944_p12 }
  0x2a   : > { %954 = shalt.err (!%p951_p10)
}
  0x2b   : > { %863 = dma.hbm_to_vmem [thread:$0]  (!%p1151_p13), %s1359_s4, 16, %s251_s18, [#allocation4]  }
  0x2c   : > { %p1372_p0 = scmp.ne.s32.totalorder %s1369_s15, 0 }
  0x2d   : > { %p1373_p2 = scmp.ne.s32.totalorder (!%p1372_p0), %s1370_s16, 0 }
  0x2e   : > { %283 = sbr.rel (%p1372_p0) target bundleno = 719 (0x2cf), region = 48 }
  0x35   : > { %1008 = dma.done.wait (%p1373_p2), [#allocation4], 16  }
  0x36   : > { %1010 = vsyncadd (%p1373_p2), [#allocation4], 4294967280  ;;  %v1040_v0 = vmov 0.0|0.0   ;;  %vm1041_vm0 = vmmov 0   ;;  %v1042_v1 = vmov 0.0   ;;  %v337_v2 = vld [vmem:[%s1356_s1] sm:$0xff] }
  0x37   : > { %806 = vmatprep.subr.bf16.mxu0 %v1040_v0  ;;  %768 = vmatprep.mubr.msk.f32.mxu0 %vm1041_vm0, %v1042_v1  ;;  %v338_v3 = vld [vmem:[%s1356_s1 + $0x8] sm:$0xff]  ;;  %v339_v4 = vld [vmem:[%s1356_s1 + $0x10] sm:$0xff]  ;;  %v340_v6 = vld [vmem:[%s1356_s1 + $0x18] sm:$0xff]  ;;  %p321_p4 = scmp.lt.s32.totalorder %s1029_s27, 1  ;;  %s318_s10 = sand.u32 1, %s1021_s25  }
  0x38   : > { %830 = vmatprep.subr.bf16.mxu1 %v1040_v0  ;;  %803 = vmatprep.mubr.msk.f32.mxu1 %vm1041_vm0, %v1042_v1  ;;  %v807_v5 = vpack.c.bf16 %v338_v3, %v337_v2  ;;  %v810_v7 = vpack.c.bf16 %v340_v6, %v339_v4  ;;  %v341_v8 = vld [vmem:[%s1356_s1 + $0x20] sm:$0xff]  ;;  %v342_v9 = vld [vmem:[%s1356_s1 + $0x28] sm:$0xff]  ;;  %v343_v11 = vld [vmem:[%s1356_s1 + $0x30] sm:$0xff]  ;;  %s692_s12 = sshll.u32 %s318_s10, 3  ;;  %s699_s21 = sshll.u32 %s1029_s27, 7 }
  0x39   : > { %v813_v10 = vpack.c.bf16 %v342_v9, %v341_v8  ;;  %v344_v12 = vld [vmem:[%s1356_s1 + $0x38] sm:$0xff]  ;;  %v345_v14 = vld [vmem:[%s1356_s1 + $0x40] sm:$0xff]  ;;  %v346_v15 = vld [vmem:[%s1356_s1 + $0x48] sm:$0xff]  ;;  %s322_s15 = scalar_select %p321_p4, %s1029_s27, 1 }
  0x3a   : > { %808 = vmatpush3.bf16.msra.mxu0 %v807_v5  ;;  %v816_v13 = vpack.c.bf16 %v344_v12, %v343_v11  ;;  %v819_v16 = vpack.c.bf16 %v346_v15, %v345_v14  ;;  %v347_v17 = vld [vmem:[%s1356_s1 + $0x50] sm:$0xff]  ;;  %v348_v18 = vld [vmem:[%s1356_s1 + $0x58] sm:$0xff]  ;;  %v349_v20 = vld [vmem:[%s1356_s1 + $0x60] sm:$0xff]  ;;  %s320_s19 = scalar_lea.vmem [#allocation6], %s692_s12  ;;  %s1308_s23 = scalar_lea.hbm %s1362_s7, %s699_s21 }
  0x3b   : > { %809 = vmatprep.subr.bf16.mxu0 %v1040_v0  ;;  %v822_v19 = vpack.c.bf16 %v348_v18, %v347_v17  ;;  %v350_v21 = vld [vmem:[%s1356_s1 + $0x68] sm:$0xff]  ;;  %v351_v23 = vld [vmem:[%s1356_s1 + $0x70] sm:$0xff]  ;;  %v352_v24 = vld [vmem:[%s1356_s1 + $0x78] sm:$0xff]  ;;  %s693_s8 = sshll.u32 %s322_s15, 3  ;;  %s576_s18 = sshll.u32 %s320_s19, 4  ;;  %s1310_s18 = int_to_ptr.vmem [resolvable:$true] %s576_s18 }
  0x3c   : > { %v825_v22 = vpack.c.bf16 %v350_v21, %v349_v20  ;;  %v828_v25 = vpack.c.bf16 %v352_v24, %v351_v23  ;;  %s324_s17 = scalar_lea.vmem %s1355_s0, %s693_s8  ;;  %v467_v27 = vld [vmem:[%s1360_s5] sm:$0xff]  ;;  %v468_v28 = vld [vmem:[%s1360_s5 + $0x8] sm:$0xff]  ;;  %v469_v40 = vld [vmem:[%s1360_s5 + $0x10] sm:$0xff]  ;;  %s562_s16 = scalar_lea.sflag [#allocation5], %s318_s10 }
  0x3d   : > { %v336_v26 = vld [vmem:[%s324_s17] sm:$0xff]  ;;  %v831_v29 = vpack.c.bf16 %v468_v28, %v467_v27  ;;  %v470_v41 = vld [vmem:[%s1360_s5 + $0x18] sm:$0xff]  ;;  %v472_v44 = vld [vmem:[%s1360_s5 + $0x28] sm:$0xff]  ;;  %s955_s30 = scalar_lea.vmem %s1310_s18, 128  ;;  %p1374_p10 = scmp.ne.s32.totalorder %s1367_s11, 0 }
  0x3e   : > { %811 = vmatpush3.bf16.msra.mxu0 %v810_v7  ;;  %v694_v30 = vld [vmem:[%s1357_s2] ss:$0 sm:$0xff]  ;;  %v834_v42 = vpack.c.bf16 %v470_v41, %v469_v40  ;;  %v473_v46 = vld [vmem:[%s1360_s5 + $0x30] sm:$0xff]  ;;  %v474_v47 = vld [vmem:[%s1360_s5 + $0x38] sm:$0xff]  ;;  %p956_p8 = scmp.ne.s32.totalorder %s1310_s18, %s955_s30  ;;  %s1043_s27 = smov [#allocation6]  }
  0x3f   : > { %812 = vmatprep.subr.bf16.mxu0 %v1040_v0  ;;  %832 = vmatpush3.bf16.msra.mxu1 %v831_v29  ;;  %v471_v43 = vld [vmem:[%s1360_s5 + $0x20] sm:$0xff]  ;;  %v840_v48 = vpack.c.bf16 %v474_v47, %v473_v46  ;;  %v476_v50 = vld [vmem:[%s1360_s5 + $0x48] sm:$0xff]  ;;  %v477_v52 = vld [vmem:[%s1360_s5 + $0x50] sm:$0xff]  ;;  %s959_s8 = sshll.u32 %s1043_s27, 4  ;;  %s960_s8 = int_to_ptr.vmem [resolvable:$false] %s959_s8 }
  0x40   : > { %833 = vmatprep.subr.bf16.mxu1 %v1040_v0  ;;  %v837_v45 = vpack.c.bf16 %v472_v44, %v471_v43  ;;  %v475_v49 = vld [vmem:[%s1360_s5 + $0x40] sm:$0xff]  ;;  %v478_v53 = vld [vmem:[%s1360_s5 + $0x58] sm:$0xff]  ;;  %v480_v56 = vld [vmem:[%s1360_s5 + $0x68] sm:$0xff]  ;;  %p957_p11 = pnand %p956_p8, %p1374_p10  ;;  %s961_s12 = scalar_lea.vmem %s960_s8, 256 }
  0x41   : > { %v843_v51 = vpack.c.bf16 %v476_v50, %v475_v49  ;;  %v846_v54 = vpack.c.bf16 %v478_v53, %v477_v52  ;;  %v479_v55 = vld [vmem:[%s1360_s5 + $0x60] sm:$0xff]  ;;  %v481_v58 = vld [vmem:[%s1360_s5 + $0x70] sm:$0xff]  ;;  %v482_v59 = vld [vmem:[%s1360_s5 + $0x78] sm:$0xff]  ;;  %p962_p1 = scmp.lt.s32.totalorder %s1310_s18, %s960_s8  ;;  %p963_p3 = scmp.lt.s32.totalorder %s961_s12, %s955_s30 }
  0x42   : > { %814 = vmatpush3.bf16.msra.mxu0 %v813_v10  ;;  %v849_v57 = vpack.c.bf16 %v480_v56, %v479_v55  ;;  %v852_v60 = vpack.c.bf16 %v482_v59, %v481_v58  ;;  %v695_v8 = vld [vmem:[%s1358_s3] ss:$0 sm:$0xff]  ;;  %p958_p13 = pneg %p957_p11 }
  0x43   : > { %815 = vmatprep.subr.bf16.mxu0 %v1040_v0  ;;  %835 = vmatpush3.bf16.msra.mxu1 %v834_v42  ;;  %v697_v12 = vld [vmem:[%s1361_s6] ss:$0 sm:$0xff]  ;;  %p964_p5 = por %p963_p3, %p962_p1 }
  0x44   : > { %836 = vmatprep.subr.bf16.mxu1 %v1040_v0 }
  0x45   : > { %p965_p6 = pnand %p964_p5, %p958_p13 }
  0x46   : > { %817 = vmatpush3.bf16.msra.mxu0 %v816_v13 }
  0x47   : > { %818 = vmatprep.subr.bf16.mxu0 %v1040_v0  ;;  %838 = vmatpush3.bf16.msra.mxu1 %v837_v45 }
  0x48   : > { %839 = vmatprep.subr.bf16.mxu1 %v1040_v0 }
  0x4a   : > { %820 = vmatpush3.bf16.msra.mxu0 %v819_v16 }
  0x4b   : > { %821 = vmatprep.subr.bf16.mxu0 %v1040_v0  ;;  %841 = vmatpush3.bf16.msra.mxu1 %v840_v48 }
  0x4c   : > { %842 = vmatprep.subr.bf16.mxu1 %v1040_v0 }
  0x4e   : > { %823 = vmatpush3.bf16.msra.mxu0 %v822_v19 }
  0x4f   : > { %824 = vmatprep.subr.bf16.mxu0 %v1040_v0  ;;  %844 = vmatpush3.bf16.msra.mxu1 %v843_v51 }
  0x50   : > { %845 = vmatprep.subr.bf16.mxu1 %v1040_v0 }
  0x52   : > { %826 = vmatpush3.bf16.msra.mxu0 %v825_v22 }
  0x53   : > { %827 = vmatprep.subr.bf16.mxu0 %v1040_v0  ;;  %847 = vmatpush3.bf16.msra.mxu1 %v846_v54 }
  0x54   : > { %848 = vmatprep.subr.bf16.mxu1 %v1040_v0 }
  0x56   : > { %829 = vmatpush3.bf16.msra.mxu0 %v828_v25 }
  0x57   : > { %850 = vmatpush3.bf16.msra.mxu1 %v849_v57 }
  0x58   : > { %851 = vmatprep.subr.bf16.mxu1 %v1040_v0  ;;  %v696_v0 = vld [vmem:[#allocation3] ss:$0 sm:$0xff] }
  0x59   : > { %769 = vmatmul.mubr.f32.vlgmr.msra.gmra.mrb[0].mxu0 %v336_v26 }
  0x5b   : > { %853 = vmatpush3.bf16.msra.mxu1 %v852_v60 }
 0x12c   : > { %v426_v31 = vpop.f32.mrb[0].mxu0 }
 0x12d   : > { %v427_v32 = vadd.f32 %v694_v30, %v426_v31  ;;  %v770_v33 = vpop.f32.mrb[1].mxu0 }
 0x12f   : > { %v431_v34 = vmul.f32 0.70710677, %v427_v32  ;;  %v430_v36 = vmul.f32 0.5, %v427_v32 }
 0x131   : > { %923 = verf.f32 %v431_v34 }
 0x13b   : > { %v924_v35 = vpop.eup %923 }
 0x13c   : > { %v433_v37 = vadd.f32 1.0, %v924_v35 }
 0x13e   : > { %v434_v38 = vmul.f32 %v433_v37, %v430_v36 }
 0x140   : > { %435 = vadd.xlane.f32.xlu0 %v434_v38  ;;  %v438_v39 = vmul.f32 %v434_v38, %v434_v38 }
 0x144   : > { %439 = vadd.xlane.f32.xlu0 %v438_v39 }
 0x1cd   : > { %v436_v61 = vpop.xlane.xlu0 %435 }
 0x1ce   : > { %v437_v62 = vmul.f32 0.03125, %v436_v61 }
 0x1d0   : > { %v442_v1 = vmul.f32 %v437_v62, %v437_v62  ;;  %v445_v6 = vsub.f32 %v434_v38, %v437_v62 }
 0x1d1   : > { %v440_v63 = vpop.xlane.xlu0 %439 }
 0x1d2   : > { %v441_v2 = vmul.f32 0.03125, %v440_v63 }
 0x1d4   : > { %v443_v3 = vsub.f32 %v441_v2, %v442_v1 }
 0x1d6   : > { %v444_v4 = vmax.f32 %v443_v3, 0.0 }
 0x1d8   : > { %v446_v5 = vadd.f32 1e-05, %v444_v4 }
 0x1da   : > { %925 = vrsqrt.f32 %v446_v5 }
 0x1e4   : > { %v926_v7 = vpop.eup %925 }
 0x1e5   : > { %v448_v9 = vmul.f32 %v926_v7, %v445_v6 }
 0x1e7   : > { %v456_v10 = vmul.f32 %v695_v8, %v448_v9 }
 0x1e9   : > { %v464_v11 = vadd.f32 %v696_v0, %v456_v10 }
 0x1eb   : > { %804 = vmatmul.mubr.f32.vlgmr.msra.gmra.mrb[0].mxu1 %v464_v11 }
 0x2be   : > { %v556_v13 = vpop.f32.mrb[0].mxu1 }
 0x2bf   : > { %v557_v14 = vadd.f32 %v697_v12, %v556_v13  ;;  %v805_v15 = vpop.f32.mrb[1].mxu1 }
 0x2c1   : > { %560 = vst [vmem:[%s320_s19] sm:$0xff] %v557_v14 }
 0x2c2   : > { %968 = shalt.err (!%p965_p6)
}
 0x2c3   : > { %s969_s10 = scalar_lea.hbm %s1308_s23, 128  ;;  %s973_s21 = scalar_lea.hbm %s1362_s7, 256 }
 0x2c4   : > { %p970_p7 = scmp.ne.s32.totalorder %s1308_s23, %s969_s10  ;;  %p974_p0 = scmp.lt.u32.totalorder %s1308_s23, %s1362_s7 }
 0x2c5   : > { %p975_p2 = scmp.lt.u32.totalorder %s973_s21, %s969_s10  ;;  %p977_p8 = scmp.lt.u32.totalorder %s969_s10, %s1308_s23 }
 0x2c6   : > { %p971_p9 = pnand %p970_p7, %p1374_p10 }
 0x2c7   : > { %p976_p4 = por %p975_p2, %p974_p0 }
 0x2c8   : > { %p972_p12 = pneg %p971_p9 }
 0x2c9   : > { %p978_p11 = por %p977_p8, %p976_p4 }
 0x2cb   : > { %p979_p13 = pnand %p978_p11, %p972_p12 }
 0x2cd   : > { %982 = shalt.err (!%p979_p13)
}
 0x2ce   : > { %858 = dma.vmem_to_hbm [thread:$0]  (%p1374_p10), %s1310_s18, 128, %s1308_s23, %s562_s16  }
 0x2cf PF: > { %p870_p1 = scmp.ge.s32.totalorder %s1037_s29, 2  ;;  %s588_s22 = sand.u32 1, %s1017_s24  }
 0x2d0   : > { %p1375_p3 = scmp.ne.s32.totalorder %s1368_s13, 0  ;;  %s589_s30 = scalar_lea.sflag [#allocation5], %s588_s22 }
 0x2d2   : > { %p865_p5 = pnand %p870_p1, %p1375_p3 }
 0x2d4   : > { %1012 = dma.done.wait (!%p865_p5), %s589_s30, 128  }
 0x2d5   : > { %1014 = vsyncadd (!%p865_p5), %s589_s30, 4294967168  ;;  %s21_s29 = sadd.s32 1, %s1037_s29   ;;  %s1376_s24 = smov %s1021_s25 }
 0x2d6   : > { %p18_p6 = scmp.ge.s32.totalorder %s21_s29, 4   ;;  %s1377_s25 = smov %s1025_s26 }
 0x2d7   : > { %s1378_s26 = smov %s1137_s14  ;;  %s1379_s27 = smov %s1033_s28 }
 0x2d8   : > { %s1380_s28 = smov %s1382_s9  ;;  %20 = sbr.rel (!%p18_p6) target bundleno = 5 (0x5), region = 98 }
 0x2df   :  { %594 = vsyncpa [#allocation4], 1 }
 0x2e0   :  { %596 = vsyncpa [#allocation4 + $0x1], 1 }
 0x2e1   :  { %597 = vsyncpa [#allocation5], 1 }
 0x2e2   :  { %599 = vsyncpa [#allocation5 + $0x1], 1 }

</bundles_post_ra>
